<compile_context>
chip_gen: v7x
topology: tpu7x:2x2x1
jax: 0.10.0
libtpu: 0.0.40
codegen_flags: <defaults>
</compile_context>

<pallas_src>
import jax
import jax.numpy as jnp
import numpy as np
from jax import lax
from jax.experimental import pallas as pl
from jax.experimental.pallas import tpu as pltpu


# ----------------------------- small helpers -------------------------------

def _round_up(x, m):
    return (x + m - 1) // m * m


def _leaky(x, slope):
    return jnp.where(x >= 0, x, slope * x)


def _pick_batch_tile(N, requested=None):
    """Samples per grid step.  Keep >= 2 grid steps when possible (v7x has two
    TensorCores) while amortizing per-step pipeline overhead."""
    if requested is not None:
        assert N % requested == 0
        return requested
    if N <= 2:
        return 1
    bt = N // 2
    while N % bt != 0:
        bt -= 1
    return bt


def _build_boundary_masks(H, W):
    """(8, H*W) f32 masks for the 8 off-center 3x3 taps, in row-major (ky,kx)
    order with the center tap skipped.  Built once on the host; passed to the
    kernel with a constant index_map so it stays VMEM-resident."""
    HW = H * W
    hh, ww = np.divmod(np.arange(HW, dtype=np.int64), W)
    rows = []
    for ky in range(3):
        for kx in range(3):
            dy, dx = ky - 1, kx - 1
            if dy == 0 and dx == 0:
                continue
            m = np.ones(HW, np.float32)
            if dy < 0:
                m = m * (hh >= -dy)
            if dy > 0:
                m = m * (hh < H - dy)
            if dx < 0:
                m = m * (ww >= -dx)
            if dx > 0:
                m = m * (ww < W - dx)
            rows.append(m.astype(np.float32))
    return jnp.asarray(np.stack(rows, axis=0))


# ----------------------------- kernel helpers ------------------------------

def _conv3x3_lane(x, w_t_bf16, bias_col, mask_rows, H, W):
    """3x3 / stride 1 / pad 1 conv in lane-dense layout.

    x: (Cin_pad, H*W) f32, w_t_bf16: (Cout_pad, 9*Cin_pad) bf16,
    bias_col: (Cout_pad, 1) f32, mask_rows: list of 8 (1, H*W) f32 masks.
    Returns (Cout_pad, H*W) f32.
    """
    HW = H * W
    taps = []
    mi = 0
    for ky in range(3):
        for kx in range(3):
            dy, dx = ky - 1, kx - 1
            if dy == 0 and dx == 0:
                taps.append(x)
                continue
            # shifted[h*W + w] = x[h+dy, w+dx]  (zeroed outside via mask)
            shift = (-(dy * W + dx)) % HW
            xs = pltpu.roll(x, shift, axis=1) * mask_rows[mi]
            mi += 1
            taps.append(xs)
    # Cin_pad is a multiple of 8 -> aligned sublane stacking, K divisible by 8.
    # Cast only the dot operands to bf16 (f32 accumulate); elementwise math
    # stays f32 everywhere (v5e has no native bf16 VPU).
    patches = jnp.concatenate(taps, axis=0).astype(jnp.bfloat16)   # (9*Cin_pad, HW)
    out = jnp.dot(w_t_bf16, patches, preferred_element_type=jnp.float32)
    return out + bias_col


def _make_kernel(H, W, c_pad, mid_pad, use_atten, bt, per_sample_bias0):
    HW = H * W

    def kernel(*refs):
        idx = 0
        x_ref = refs[idx]; idx += 1        # (bt, c_pad, HW)     f32, lane-dense
        bias0_ref = refs[idx]; idx += 1    # (bt|1, mid_pad, 1)  f32 (= b0 [+ emb])
        mask_ref = refs[idx]; idx += 1     # (8, HW)             f32, grid-invariant
        w0t_ref = refs[idx]; idx += 1      # (mid_pad, 9*c_pad)  bf16
        w1t_ref = refs[idx]; idx += 1      # (c_pad, 9*mid_pad)  bf16
        b1_ref = refs[idx]; idx += 1       # (c_pad, 1)          f32
        if use_atten:
            wa0t_ref = refs[idx]; idx += 1  # (c_pad, 9*c_pad)   bf16
            ba0_ref = refs[idx]; idx += 1   # (c_pad, 1)         f32
            wa1t_ref = refs[idx]; idx += 1  # (c_pad, 9*c_pad)   bf16
            ba1_ref = refs[idx]; idx += 1   # (c_pad, 1)         f32
        o_ref = refs[idx]                  # (bt, c_pad, HW)     f32

        # Hoisted once per grid step (shared by every conv / every sample).
        mask_full = mask_ref[...]
        mask_rows = [mask_full[i:i + 1, :] for i in range(8)]
        w0t = w0t_ref[...]
        w1t = w1t_ref[...]
        b1 = b1_ref[...]
        if use_atten:
            wa0t = wa0t_ref[...]; ba0 = ba0_ref[...]
            wa1t = wa1t_ref[...]; ba1 = ba1_ref[...]

        for b in range(bt):                # static unroll over the batch tile
            x = x_ref[b]                                       # (c_pad, HW)
            bias0 = bias0_ref[b] if per_sample_bias0 else bias0_ref[0]

            # ---- x = c0(inp) (+ emb), leaky_relu(0.2) ----
            y = _leaky(_conv3x3_lane(x, w0t, bias0, mask_rows, H, W), 0.2)

            # ---- x = c1(x) ----
            z = _conv3x3_lane(y, w1t, b1, mask_rows, H, W)

            # ---- SimpleAtten (all f32) ----
            if use_atten:
                a = _leaky(_conv3x3_lane(z, wa0t, ba0, mask_rows, H, W), 0.1)
                a = _leaky(_conv3x3_lane(a, wa1t, ba1, mask_rows, H, W), 0.1)
                mean = jnp.sum(a, axis=1, keepdims=True) * (1.0 / HW)   # (c_pad,1)
                d = (a - mean) ** 2
                dsum = jnp.sum(d, axis=1, keepdims=True)                # (c_pad,1)
                inv = pl.reciprocal(4.0 * (dsum * (1.0 / (HW - 1)) + 1e-4))
                att = d * inv + 0.5
                z = z * jax.nn.sigmoid(att)

            # ---- leaky_relu(x + inp, 0.2) ----  (256-lane unmasked store)
            o_ref[b] = _leaky(z + x, 0.2)

    return kernel


# ------------------------------- wrapper ------------------------------------

def _pack_weight_t(w, cin_pad, cout_pad):
    """(9, cin, cout) f32 -> (cout_pad, 9*cin_pad) bf16 (zero-padded channels)."""
    _, cin, cout = w.shape
    wp = jnp.zeros((9, cin_pad, cout_pad), jnp.float32)
    wp = wp.at[:, :cin, :cout].set(w.astype(jnp.float32))
    return wp.reshape(9 * cin_pad, cout_pad).T.astype(jnp.bfloat16)


def _pad_bias_col(b, c_pad):
    b = jnp.asarray(b, jnp.float32).reshape(-1)
    c = b.shape[0]
    if c_pad != c:
        b = jnp.pad(b, (0, c_pad - c))
    return b.reshape(c_pad, 1)


def residual_block_forward(x_nchw, params, emb=None, atten=False, batch_tile=None):
    """x_nchw: (N, ch, H, W) float32; emb: (N, mid_ch) or None. Returns NCHW."""
    N, C, H, W = x_nchw.shape
    HW = H * W
    mid = params["w0"].shape[-1]
    assert HW > 1, "SimpleAtten variance normalization needs H*W > 1"

    # 8-sublane channel padding (aligned taps / K divisible by 8).
    C_pad = _round_up(C, 8)
    mid_pad = _round_up(mid, 8)

    bt = _pick_batch_tile(N, batch_tile)
    grid_n = N // bt

    # Lane-dense layout: NCHW -> (N, C_pad, H*W); spatial on the lane axis.
    x_flat = x_nchw.reshape(N, C, HW).astype(jnp.float32)
    if C_pad != C:
        x_flat = jnp.pad(x_flat, ((0, 0), (0, C_pad - C), (0, 0)))

    # Weights pre-arranged and cast once on the wrapper side (bf16 dot operands).
    w0t = _pack_weight_t(params["w0"], C_pad, mid_pad)        # (mid_pad, 9*C_pad)
    w1t = _pack_weight_t(params["w1"], mid_pad, C_pad)        # (C_pad, 9*mid_pad)
    b1c = _pad_bias_col(params["b1"], C_pad)                  # (C_pad, 1)

    # Fold bias0 and the optional per-sample emb into one (.., mid_pad, 1) column.
    bias0 = _pad_bias_col(params["b0"], mid_pad).reshape(1, mid_pad, 1)
    if emb is not None:
        emb_p = jnp.asarray(emb, jnp.float32)
        if mid_pad != mid:
            emb_p = jnp.pad(emb_p, ((0, 0), (0, mid_pad - mid)))
        bias0 = bias0 + emb_p[:, :, None]                      # (N, mid_pad, 1)
    per_sample_bias0 = bias0.shape[0] != 1

    # Grid-invariant boundary masks, built once on the host.
    masks = _build_boundary_masks(H, W)                        # (8, HW)

    def _full(arr):
        nd = arr.ndim
        # TODO(synk): at production channel counts mark these grid-invariant
        # specs single-buffered (pipeline_mode=pl.Buffered(1)) to save VMEM.
        return pl.BlockSpec(arr.shape, lambda n, _nd=nd: (0,) * _nd)

    inputs = [x_flat, bias0, masks, w0t, w1t, b1c]
    in_specs = [
        pl.BlockSpec((bt, C_pad, HW), lambda n: (n, 0, 0)),
        pl.BlockSpec((bt, mid_pad, 1),
                     (lambda n: (n, 0, 0))) if per_sample_bias0
        else pl.BlockSpec((1, mid_pad, 1), lambda n: (0, 0, 0)),
        _full(masks), _full(w0t), _full(w1t), _full(b1c),
    ]
    if atten:
        wa0t = _pack_weight_t(params["wa0"], C_pad, C_pad)
        wa1t = _pack_weight_t(params["wa1"], C_pad, C_pad)
        ba0c = _pad_bias_col(params["ba0"], C_pad)
        ba1c = _pad_bias_col(params["ba1"], C_pad)
        inputs += [wa0t, ba0c, wa1t, ba1c]
        in_specs += [_full(wa0t), _full(ba0c), _full(wa1t), _full(ba1c)]

    kernel = _make_kernel(H, W, C_pad, mid_pad, atten, bt, per_sample_bias0)

    out_flat = pl.pallas_call(
        kernel,
        out_shape=jax.ShapeDtypeStruct((N, C_pad, HW), jnp.float32),
        grid_spec=pltpu.PrefetchScalarGridSpec(
            num_scalar_prefetch=0,
            grid=(grid_n,),
            in_specs=in_specs,
            out_specs=pl.BlockSpec((bt, C_pad, HW), lambda n: (n, 0, 0)),
        ),
        compiler_params=pltpu.CompilerParams(
            dimension_semantics=("parallel",),      # batch tiles are independent
            vmem_limit_bytes=32 * 1024 * 1024,
        ),
    )(*inputs)

    return out_flat[:, :C, :].reshape(N, C, H, W)


# --------------------------- pure-JAX reference ------------------------------

def _ref_forward_nhwc(x, params, emb, atten):
    def conv(v, w, b):
        w4 = w.reshape(3, 3, w.shape[1], w.shape[2])              # HWIO
        y = lax.conv_general_dilated(v, w4, (1, 1), "SAME",
                                     dimension_numbers=("NHWC", "HWIO", "NHWC"))
        return y + b.reshape(1, 1, 1, -1)

    y = conv(x, params["w0"], params["b0"])
    if emb is not None:
        y = y + emb[:, None, None, :]
    y = jnp.where(y >= 0, y, 0.2 * y)
    z = conv(y, params["w1"], params["b1"])
    if atten:
        a = conv(z, params["wa0"], params["ba0"])
        a = jnp.where(a >= 0, a, 0.1 * a)
        a = conv(a, params["wa1"], params["ba1"])
        a = jnp.where(a >= 0, a, 0.1 * a)
        H, W = a.shape[1], a.shape[2]
        m = jnp.mean(a, axis=(1, 2), keepdims=True)
        d = (a - m) ** 2
        att = d / (4.0 * (jnp.sum(d, axis=(1, 2), keepdims=True)
                          / float(W * H - 1) + 1e-4)) + 0.5
        z = z * jax.nn.sigmoid(att)
    out = z + x
    return jnp.where(out >= 0, out, 0.2 * out)


# --------------------------------- main --------------------------------------

def _init_params(key, ch, mid_ch, atten):
    """Deterministic conv params (kaiming-uniform-like), stored as (9, Cin, Cout)."""
    def conv_init(k, cin, cout):
        kw, kb = jax.random.split(k)
        bound = 1.0 / np.sqrt(cin * 9)
        w = jax.random.uniform(kw, (9, cin, cout), jnp.float32, -bound, bound)
        b = jax.random.uniform(kb, (1, cout), jnp.float32, -bound, bound)
        return w, b

    keys = jax.random.split(key, 4)
    params = {}
    params["w0"], params["b0"] = conv_init(keys[0], ch, mid_ch)
    params["w1"], params["b1"] = conv_init(keys[1], mid_ch, ch)
    if atten:
        params["wa0"], params["ba0"] = conv_init(keys[2], ch, ch)
        params["wa1"], params["ba1"] = conv_init(keys[3], ch, ch)
    return params


if __name__ == "__main__":
    N, CH, H, W = 2, 4, 16, 16
    MID = CH            # mid_ch defaults to ch
    USE_ATTEN = True    # exercise SimpleAtten path too
    key = jax.random.PRNGKey(0)
    kx, ke, kp = jax.random.split(key, 3)

    x = jax.random.normal(kx, (N, CH, H, W), jnp.float32)          # NCHW like torch
    emb = jax.random.normal(ke, (N, MID), jnp.float32)             # per-channel emb
    params = _init_params(kp, CH, MID, USE_ATTEN)

    out = residual_block_forward(x, params, emb=emb, atten=USE_ATTEN)
    out = jax.block_until_ready(out)

    # correctness check vs pure-JAX f32 reference (tolerance loosened for the
    # bf16 matmul operands; accumulation and all elementwise math are f32).
    x_nhwc = jnp.transpose(x, (0, 2, 3, 1))
    ref = _ref_forward_nhwc(x_nhwc, params, emb, USE_ATTEN)
    ref = jnp.transpose(ref, (0, 3, 1, 2))
    np.testing.assert_allclose(np.asarray(out), np.asarray(ref),
                               rtol=3e-2, atol=3e-2)

    print("KERNEL_OK")
</pallas_src>

<mosaic_0001>
module attributes {stable_mosaic.version = 11 : i64} {
  func.func @kernel(%arg0: i32, %arg1: memref<1x8x256xf32, #tpu.memory_space<vmem>>, %arg2: memref<1x8x1xf32, #tpu.memory_space<vmem>>, %arg3: memref<8x256xf32, #tpu.memory_space<vmem>>, %arg4: memref<8x72xbf16, #tpu.memory_space<vmem>>, %arg5: memref<8x72xbf16, #tpu.memory_space<vmem>>, %arg6: memref<8x1xf32, #tpu.memory_space<vmem>>, %arg7: memref<8x72xbf16, #tpu.memory_space<vmem>>, %arg8: memref<8x1xf32, #tpu.memory_space<vmem>>, %arg9: memref<8x72xbf16, #tpu.memory_space<vmem>>, %arg10: memref<8x1xf32, #tpu.memory_space<vmem>>, %arg11: memref<1x8x256xf32, #tpu.memory_space<vmem>>) attributes {dimension_semantics = [#tpu.dimension_semantics<parallel>], iteration_bounds = array<i64: 2>, scalar_prefetch = 0 : i64, scratch_operands = 0 : i64, tpu.core_type = #tpu.core_type<tc>, window_params = [{transform_indices = @transform_0, window_bounds = array<i64: 1, 8, 256>}, {transform_indices = @transform_1, window_bounds = array<i64: 1, 8, 1>}, {pipeline_mode = #tpu.pipeline_mode<synchronous>, transform_indices = @transform_2, window_bounds = array<i64: 8, 256>}, {pipeline_mode = #tpu.pipeline_mode<synchronous>, transform_indices = @transform_3, window_bounds = array<i64: 8, 72>}, {pipeline_mode = #tpu.pipeline_mode<synchronous>, transform_indices = @transform_4, window_bounds = array<i64: 8, 72>}, {pipeline_mode = #tpu.pipeline_mode<synchronous>, transform_indices = @transform_5, window_bounds = array<i64: 8, 1>}, {pipeline_mode = #tpu.pipeline_mode<synchronous>, transform_indices = @transform_6, window_bounds = array<i64: 8, 72>}, {pipeline_mode = #tpu.pipeline_mode<synchronous>, transform_indices = @transform_7, window_bounds = array<i64: 8, 1>}, {pipeline_mode = #tpu.pipeline_mode<synchronous>, transform_indices = @transform_8, window_bounds = array<i64: 8, 72>}, {pipeline_mode = #tpu.pipeline_mode<synchronous>, transform_indices = @transform_9, window_bounds = array<i64: 8, 1>}, {transform_indices = @transform_10, window_bounds = array<i64: 1, 8, 256>}]} {
    %c0 = arith.constant 0 : index
    %c0_0 = arith.constant 0 : index
    %0 = vector.load %arg3[%c0, %c0_0] : memref<8x256xf32, #tpu.memory_space<vmem>>, vector<8x256xf32>
    %1 = vector.extract_strided_slice %0 {offsets = [0, 0], sizes = [1, 256], strides = [1, 1]} : vector<8x256xf32> to vector<1x256xf32>
    %2 = vector.extract_strided_slice %0 {offsets = [1, 0], sizes = [1, 256], strides = [1, 1]} : vector<8x256xf32> to vector<1x256xf32>
    %3 = vector.extract_strided_slice %0 {offsets = [2, 0], sizes = [1, 256], strides = [1, 1]} : vector<8x256xf32> to vector<1x256xf32>
    %4 = vector.extract_strided_slice %0 {offsets = [3, 0], sizes = [1, 256], strides = [1, 1]} : vector<8x256xf32> to vector<1x256xf32>
    %5 = vector.extract_strided_slice %0 {offsets = [4, 0], sizes = [1, 256], strides = [1, 1]} : vector<8x256xf32> to vector<1x256xf32>
    %6 = vector.extract_strided_slice %0 {offsets = [5, 0], sizes = [1, 256], strides = [1, 1]} : vector<8x256xf32> to vector<1x256xf32>
    %7 = vector.extract_strided_slice %0 {offsets = [6, 0], sizes = [1, 256], strides = [1, 1]} : vector<8x256xf32> to vector<1x256xf32>
    %8 = vector.extract_strided_slice %0 {offsets = [7, 0], sizes = [1, 256], strides = [1, 1]} : vector<8x256xf32> to vector<1x256xf32>
    %c0_1 = arith.constant 0 : index
    %c0_2 = arith.constant 0 : index
    %9 = vector.load %arg4[%c0_1, %c0_2] : memref<8x72xbf16, #tpu.memory_space<vmem>>, vector<8x72xbf16>
    %c0_3 = arith.constant 0 : index
    %c0_4 = arith.constant 0 : index
    %10 = vector.load %arg5[%c0_3, %c0_4] : memref<8x72xbf16, #tpu.memory_space<vmem>>, vector<8x72xbf16>
    %c0_5 = arith.constant 0 : index
    %c0_6 = arith.constant 0 : index
    %11 = vector.load %arg6[%c0_5, %c0_6] : memref<8x1xf32, #tpu.memory_space<vmem>>, vector<8x1xf32>
    %c0_7 = arith.constant 0 : index
    %c0_8 = arith.constant 0 : index
    %12 = vector.load %arg7[%c0_7, %c0_8] : memref<8x72xbf16, #tpu.memory_space<vmem>>, vector<8x72xbf16>
    %c0_9 = arith.constant 0 : index
    %c0_10 = arith.constant 0 : index
    %13 = vector.load %arg8[%c0_9, %c0_10] : memref<8x1xf32, #tpu.memory_space<vmem>>, vector<8x1xf32>
    %c0_11 = arith.constant 0 : index
    %c0_12 = arith.constant 0 : index
    %14 = vector.load %arg9[%c0_11, %c0_12] : memref<8x72xbf16, #tpu.memory_space<vmem>>, vector<8x72xbf16>
    %c0_13 = arith.constant 0 : index
    %c0_14 = arith.constant 0 : index
    %15 = vector.load %arg10[%c0_13, %c0_14] : memref<8x1xf32, #tpu.memory_space<vmem>>, vector<8x1xf32>
    %c0_15 = arith.constant 0 : index
    %c0_16 = arith.constant 0 : index
    %c0_17 = arith.constant 0 : index
    %16 = vector.load %arg1[%c0_15, %c0_16, %c0_17] : memref<1x8x256xf32, #tpu.memory_space<vmem>>, vector<1x8x256xf32>
    %17 = vector.shape_cast %16 : vector<1x8x256xf32> to vector<8x256xf32>
    %c0_18 = arith.constant 0 : index
    %c0_19 = arith.constant 0 : index
    %c0_20 = arith.constant 0 : index
    %18 = vector.load %arg2[%c0_18, %c0_19, %c0_20] : memref<1x8x1xf32, #tpu.memory_space<vmem>>, vector<1x8x1xf32>
    %19 = vector.shape_cast %18 : vector<1x8x1xf32> to vector<8x1xf32>
    %c17_i32 = arith.constant 17 : i32
    %20 = tpu.dynamic_rotate %17 by %c17_i32 dim 1 : vector<8x256xf32>, i32 -> vector<8x256xf32>
    %21 = vector.broadcast %1 : vector<1x256xf32> to vector<8x256xf32>
    %22 = arith.mulf %20, %21 : vector<8x256xf32>
    %c16_i32 = arith.constant 16 : i32
    %23 = tpu.dynamic_rotate %17 by %c16_i32 dim 1 : vector<8x256xf32>, i32 -> vector<8x256xf32>
    %24 = vector.broadcast %2 : vector<1x256xf32> to vector<8x256xf32>
    %25 = arith.mulf %23, %24 : vector<8x256xf32>
    %c15_i32 = arith.constant 15 : i32
    %26 = tpu.dynamic_rotate %17 by %c15_i32 dim 1 : vector<8x256xf32>, i32 -> vector<8x256xf32>
    %27 = vector.broadcast %3 : vector<1x256xf32> to vector<8x256xf32>
    %28 = arith.mulf %26, %27 : vector<8x256xf32>
    %c1_i32 = arith.constant 1 : i32
    %29 = tpu.dynamic_rotate %17 by %c1_i32 dim 1 : vector<8x256xf32>, i32 -> vector<8x256xf32>
    %30 = vector.broadcast %4 : vector<1x256xf32> to vector<8x256xf32>
    %31 = arith.mulf %29, %30 : vector<8x256xf32>
    %c255_i32 = arith.constant 255 : i32
    %32 = tpu.dynamic_rotate %17 by %c255_i32 dim 1 : vector<8x256xf32>, i32 -> vector<8x256xf32>
    %33 = vector.broadcast %5 : vector<1x256xf32> to vector<8x256xf32>
    %34 = arith.mulf %32, %33 : vector<8x256xf32>
    %c241_i32 = arith.constant 241 : i32
    %35 = tpu.dynamic_rotate %17 by %c241_i32 dim 1 : vector<8x256xf32>, i32 -> vector<8x256xf32>
    %36 = vector.broadcast %6 : vector<1x256xf32> to vector<8x256xf32>
    %37 = arith.mulf %35, %36 : vector<8x256xf32>
    %c240_i32 = arith.constant 240 : i32
    %38 = tpu.dynamic_rotate %17 by %c240_i32 dim 1 : vector<8x256xf32>, i32 -> vector<8x256xf32>
    %39 = vector.broadcast %7 : vector<1x256xf32> to vector<8x256xf32>
    %40 = arith.mulf %38, %39 : vector<8x256xf32>
    %c239_i32 = arith.constant 239 : i32
    %41 = tpu.dynamic_rotate %17 by %c239_i32 dim 1 : vector<8x256xf32>, i32 -> vector<8x256xf32>
    %42 = vector.broadcast %8 : vector<1x256xf32> to vector<8x256xf32>
    %43 = arith.mulf %41, %42 : vector<8x256xf32>
    %44 = tpu.concatenate %22, %25, %28, %31, %17, %34, %37, %40, %43 in 0 : vector<8x256xf32>, vector<8x256xf32>, vector<8x256xf32>, vector<8x256xf32>, vector<8x256xf32>, vector<8x256xf32>, vector<8x256xf32>, vector<8x256xf32>, vector<8x256xf32> -> vector<72x256xf32>
    %45 = arith.truncf %44 : vector<72x256xf32> to vector<72x256xbf16>
    %cst = arith.constant dense<0.000000e+00> : vector<8x256xf32>
    %46 = tpu.matmul %9, %45, %cst {dimension_numbers = #tpu.dot_dimension_numbers<[1], [0], [0], [1], [0, 0, 1, 1], [], []>} : vector<8x72xbf16>, vector<72x256xbf16>, vector<8x256xf32> -> vector<8x256xf32>
    %47 = vector.broadcast %19 : vector<8x1xf32> to vector<8x256xf32>
    %48 = arith.addf %46, %47 : vector<8x256xf32>
    %cst_21 = arith.constant 0.000000e+00 : f32
    %49 = vector.broadcast %cst_21 : f32 to vector<8x256xf32>
    %50 = arith.cmpf oge, %48, %49 : vector<8x256xf32>
    %cst_22 = arith.constant 2.000000e-01 : f32
    %51 = vector.broadcast %cst_22 : f32 to vector<8x256xf32>
    %52 = arith.mulf %51, %48 : vector<8x256xf32>
    %53 = arith.select %50, %48, %52 : vector<8x256xi1>, vector<8x256xf32>
    %c17_i32_23 = arith.constant 17 : i32
    %54 = tpu.dynamic_rotate %53 by %c17_i32_23 dim 1 : vector<8x256xf32>, i32 -> vector<8x256xf32>
    %55 = vector.broadcast %1 : vector<1x256xf32> to vector<8x256xf32>
    %56 = arith.mulf %54, %55 : vector<8x256xf32>
    %c16_i32_24 = arith.constant 16 : i32
    %57 = tpu.dynamic_rotate %53 by %c16_i32_24 dim 1 : vector<8x256xf32>, i32 -> vector<8x256xf32>
    %58 = vector.broadcast %2 : vector<1x256xf32> to vector<8x256xf32>
    %59 = arith.mulf %57, %58 : vector<8x256xf32>
    %c15_i32_25 = arith.constant 15 : i32
    %60 = tpu.dynamic_rotate %53 by %c15_i32_25 dim 1 : vector<8x256xf32>, i32 -> vector<8x256xf32>
    %61 = vector.broadcast %3 : vector<1x256xf32> to vector<8x256xf32>
    %62 = arith.mulf %60, %61 : vector<8x256xf32>
    %c1_i32_26 = arith.constant 1 : i32
    %63 = tpu.dynamic_rotate %53 by %c1_i32_26 dim 1 : vector<8x256xf32>, i32 -> vector<8x256xf32>
    %64 = vector.broadcast %4 : vector<1x256xf32> to vector<8x256xf32>
    %65 = arith.mulf %63, %64 : vector<8x256xf32>
    %c255_i32_27 = arith.constant 255 : i32
    %66 = tpu.dynamic_rotate %53 by %c255_i32_27 dim 1 : vector<8x256xf32>, i32 -> vector<8x256xf32>
    %67 = vector.broadcast %5 : vector<1x256xf32> to vector<8x256xf32>
    %68 = arith.mulf %66, %67 : vector<8x256xf32>
    %c241_i32_28 = arith.constant 241 : i32
    %69 = tpu.dynamic_rotate %53 by %c241_i32_28 dim 1 : vector<8x256xf32>, i32 -> vector<8x256xf32>
    %70 = vector.broadcast %6 : vector<1x256xf32> to vector<8x256xf32>
    %71 = arith.mulf %69, %70 : vector<8x256xf32>
    %c240_i32_29 = arith.constant 240 : i32
    %72 = tpu.dynamic_rotate %53 by %c240_i32_29 dim 1 : vector<8x256xf32>, i32 -> vector<8x256xf32>
    %73 = vector.broadcast %7 : vector<1x256xf32> to vector<8x256xf32>
    %74 = arith.mulf %72, %73 : vector<8x256xf32>
    %c239_i32_30 = arith.constant 239 : i32
    %75 = tpu.dynamic_rotate %53 by %c239_i32_30 dim 1 : vector<8x256xf32>, i32 -> vector<8x256xf32>
    %76 = vector.broadcast %8 : vector<1x256xf32> to vector<8x256xf32>
    %77 = arith.mulf %75, %76 : vector<8x256xf32>
    %78 = tpu.concatenate %56, %59, %62, %65, %53, %68, %71, %74, %77 in 0 : vector<8x256xf32>, vector<8x256xf32>, vector<8x256xf32>, vector<8x256xf32>, vector<8x256xf32>, vector<8x256xf32>, vector<8x256xf32>, vector<8x256xf32>, vector<8x256xf32> -> vector<72x256xf32>
    %79 = arith.truncf %78 : vector<72x256xf32> to vector<72x256xbf16>
    %cst_31 = arith.constant dense<0.000000e+00> : vector<8x256xf32>
    %80 = tpu.matmul %10, %79, %cst_31 {dimension_numbers = #tpu.dot_dimension_numbers<[1], [0], [0], [1], [0, 0, 1, 1], [], []>} : vector<8x72xbf16>, vector<72x256xbf16>, vector<8x256xf32> -> vector<8x256xf32>
    %81 = vector.broadcast %11 : vector<8x1xf32> to vector<8x256xf32>
    %82 = arith.addf %80, %81 : vector<8x256xf32>
    %c17_i32_32 = arith.constant 17 : i32
    %83 = tpu.dynamic_rotate %82 by %c17_i32_32 dim 1 : vector<8x256xf32>, i32 -> vector<8x256xf32>
    %84 = vector.broadcast %1 : vector<1x256xf32> to vector<8x256xf32>
    %85 = arith.mulf %83, %84 : vector<8x256xf32>
    %c16_i32_33 = arith.constant 16 : i32
    %86 = tpu.dynamic_rotate %82 by %c16_i32_33 dim 1 : vector<8x256xf32>, i32 -> vector<8x256xf32>
    %87 = vector.broadcast %2 : vector<1x256xf32> to vector<8x256xf32>
    %88 = arith.mulf %86, %87 : vector<8x256xf32>
    %c15_i32_34 = arith.constant 15 : i32
    %89 = tpu.dynamic_rotate %82 by %c15_i32_34 dim 1 : vector<8x256xf32>, i32 -> vector<8x256xf32>
    %90 = vector.broadcast %3 : vector<1x256xf32> to vector<8x256xf32>
    %91 = arith.mulf %89, %90 : vector<8x256xf32>
    %c1_i32_35 = arith.constant 1 : i32
    %92 = tpu.dynamic_rotate %82 by %c1_i32_35 dim 1 : vector<8x256xf32>, i32 -> vector<8x256xf32>
    %93 = vector.broadcast %4 : vector<1x256xf32> to vector<8x256xf32>
    %94 = arith.mulf %92, %93 : vector<8x256xf32>
    %c255_i32_36 = arith.constant 255 : i32
    %95 = tpu.dynamic_rotate %82 by %c255_i32_36 dim 1 : vector<8x256xf32>, i32 -> vector<8x256xf32>
    %96 = vector.broadcast %5 : vector<1x256xf32> to vector<8x256xf32>
    %97 = arith.mulf %95, %96 : vector<8x256xf32>
    %c241_i32_37 = arith.constant 241 : i32
    %98 = tpu.dynamic_rotate %82 by %c241_i32_37 dim 1 : vector<8x256xf32>, i32 -> vector<8x256xf32>
    %99 = vector.broadcast %6 : vector<1x256xf32> to vector<8x256xf32>
    %100 = arith.mulf %98, %99 : vector<8x256xf32>
    %c240_i32_38 = arith.constant 240 : i32
    %101 = tpu.dynamic_rotate %82 by %c240_i32_38 dim 1 : vector<8x256xf32>, i32 -> vector<8x256xf32>
    %102 = vector.broadcast %7 : vector<1x256xf32> to vector<8x256xf32>
    %103 = arith.mulf %101, %102 : vector<8x256xf32>
    %c239_i32_39 = arith.constant 239 : i32
    %104 = tpu.dynamic_rotate %82 by %c239_i32_39 dim 1 : vector<8x256xf32>, i32 -> vector<8x256xf32>
    %105 = vector.broadcast %8 : vector<1x256xf32> to vector<8x256xf32>
    %106 = arith.mulf %104, %105 : vector<8x256xf32>
    %107 = tpu.concatenate %85, %88, %91, %94, %82, %97, %100, %103, %106 in 0 : vector<8x256xf32>, vector<8x256xf32>, vector<8x256xf32>, vector<8x256xf32>, vector<8x256xf32>, vector<8x256xf32>, vector<8x256xf32>, vector<8x256xf32>, vector<8x256xf32> -> vector<72x256xf32>
    %108 = arith.truncf %107 : vector<72x256xf32> to vector<72x256xbf16>
    %cst_40 = arith.constant dense<0.000000e+00> : vector<8x256xf32>
    %109 = tpu.matmul %12, %108, %cst_40 {dimension_numbers = #tpu.dot_dimension_numbers<[1], [0], [0], [1], [0, 0, 1, 1], [], []>} : vector<8x72xbf16>, vector<72x256xbf16>, vector<8x256xf32> -> vector<8x256xf32>
    %110 = vector.broadcast %13 : vector<8x1xf32> to vector<8x256xf32>
    %111 = arith.addf %109, %110 : vector<8x256xf32>
    %cst_41 = arith.constant 0.000000e+00 : f32
    %112 = vector.broadcast %cst_41 : f32 to vector<8x256xf32>
    %113 = arith.cmpf oge, %111, %112 : vector<8x256xf32>
    %cst_42 = arith.constant 1.000000e-01 : f32
    %114 = vector.broadcast %cst_42 : f32 to vector<8x256xf32>
    %115 = arith.mulf %114, %111 : vector<8x256xf32>
    %116 = arith.select %113, %111, %115 : vector<8x256xi1>, vector<8x256xf32>
    %c17_i32_43 = arith.constant 17 : i32
    %117 = tpu.dynamic_rotate %116 by %c17_i32_43 dim 1 : vector<8x256xf32>, i32 -> vector<8x256xf32>
    %118 = vector.broadcast %1 : vector<1x256xf32> to vector<8x256xf32>
    %119 = arith.mulf %117, %118 : vector<8x256xf32>
    %c16_i32_44 = arith.constant 16 : i32
    %120 = tpu.dynamic_rotate %116 by %c16_i32_44 dim 1 : vector<8x256xf32>, i32 -> vector<8x256xf32>
    %121 = vector.broadcast %2 : vector<1x256xf32> to vector<8x256xf32>
    %122 = arith.mulf %120, %121 : vector<8x256xf32>
    %c15_i32_45 = arith.constant 15 : i32
    %123 = tpu.dynamic_rotate %116 by %c15_i32_45 dim 1 : vector<8x256xf32>, i32 -> vector<8x256xf32>
    %124 = vector.broadcast %3 : vector<1x256xf32> to vector<8x256xf32>
    %125 = arith.mulf %123, %124 : vector<8x256xf32>
    %c1_i32_46 = arith.constant 1 : i32
    %126 = tpu.dynamic_rotate %116 by %c1_i32_46 dim 1 : vector<8x256xf32>, i32 -> vector<8x256xf32>
    %127 = vector.broadcast %4 : vector<1x256xf32> to vector<8x256xf32>
    %128 = arith.mulf %126, %127 : vector<8x256xf32>
    %c255_i32_47 = arith.constant 255 : i32
    %129 = tpu.dynamic_rotate %116 by %c255_i32_47 dim 1 : vector<8x256xf32>, i32 -> vector<8x256xf32>
    %130 = vector.broadcast %5 : vector<1x256xf32> to vector<8x256xf32>
    %131 = arith.mulf %129, %130 : vector<8x256xf32>
    %c241_i32_48 = arith.constant 241 : i32
    %132 = tpu.dynamic_rotate %116 by %c241_i32_48 dim 1 : vector<8x256xf32>, i32 -> vector<8x256xf32>
    %133 = vector.broadcast %6 : vector<1x256xf32> to vector<8x256xf32>
    %134 = arith.mulf %132, %133 : vector<8x256xf32>
    %c240_i32_49 = arith.constant 240 : i32
    %135 = tpu.dynamic_rotate %116 by %c240_i32_49 dim 1 : vector<8x256xf32>, i32 -> vector<8x256xf32>
    %136 = vector.broadcast %7 : vector<1x256xf32> to vector<8x256xf32>
    %137 = arith.mulf %135, %136 : vector<8x256xf32>
    %c239_i32_50 = arith.constant 239 : i32
    %138 = tpu.dynamic_rotate %116 by %c239_i32_50 dim 1 : vector<8x256xf32>, i32 -> vector<8x256xf32>
    %139 = vector.broadcast %8 : vector<1x256xf32> to vector<8x256xf32>
    %140 = arith.mulf %138, %139 : vector<8x256xf32>
    %141 = tpu.concatenate %119, %122, %125, %128, %116, %131, %134, %137, %140 in 0 : vector<8x256xf32>, vector<8x256xf32>, vector<8x256xf32>, vector<8x256xf32>, vector<8x256xf32>, vector<8x256xf32>, vector<8x256xf32>, vector<8x256xf32>, vector<8x256xf32> -> vector<72x256xf32>
    %142 = arith.truncf %141 : vector<72x256xf32> to vector<72x256xbf16>
    %cst_51 = arith.constant dense<0.000000e+00> : vector<8x256xf32>
    %143 = tpu.matmul %14, %142, %cst_51 {dimension_numbers = #tpu.dot_dimension_numbers<[1], [0], [0], [1], [0, 0, 1, 1], [], []>} : vector<8x72xbf16>, vector<72x256xbf16>, vector<8x256xf32> -> vector<8x256xf32>
    %144 = vector.broadcast %15 : vector<8x1xf32> to vector<8x256xf32>
    %145 = arith.addf %143, %144 : vector<8x256xf32>
    %cst_52 = arith.constant 0.000000e+00 : f32
    %146 = vector.broadcast %cst_52 : f32 to vector<8x256xf32>
    %147 = arith.cmpf oge, %145, %146 : vector<8x256xf32>
    %cst_53 = arith.constant 1.000000e-01 : f32
    %148 = vector.broadcast %cst_53 : f32 to vector<8x256xf32>
    %149 = arith.mulf %148, %145 : vector<8x256xf32>
    %150 = arith.select %147, %145, %149 : vector<8x256xi1>, vector<8x256xf32>
    %cst_54 = arith.constant dense<0.000000e+00> : vector<8xf32>
    %151 = vector.multi_reduction <add>, %150, %cst_54 [1] : vector<8x256xf32> to vector<8xf32>
    %152 = vector.shape_cast %151 : vector<8xf32> to vector<8x1xf32>
    %cst_55 = arith.constant 3.906250e-03 : f32
    %153 = vector.broadcast %cst_55 : f32 to vector<8x1xf32>
    %154 = arith.mulf %152, %153 : vector<8x1xf32>
    %155 = vector.broadcast %154 : vector<8x1xf32> to vector<8x256xf32>
    %156 = arith.subf %150, %155 : vector<8x256xf32>
    %157 = arith.mulf %156, %156 : vector<8x256xf32>
    %cst_56 = arith.constant dense<0.000000e+00> : vector<8xf32>
    %158 = vector.multi_reduction <add>, %157, %cst_56 [1] : vector<8x256xf32> to vector<8xf32>
    %159 = vector.shape_cast %158 : vector<8xf32> to vector<8x1xf32>
    %cst_57 = arith.constant 0.00392156886 : f32
    %160 = vector.broadcast %cst_57 : f32 to vector<8x1xf32>
    %161 = arith.mulf %159, %160 : vector<8x1xf32>
    %cst_58 = arith.constant 9.99999974E-5 : f32
    %162 = vector.broadcast %cst_58 : f32 to vector<8x1xf32>
    %163 = arith.addf %161, %162 : vector<8x1xf32>
    %cst_59 = arith.constant 4.000000e+00 : f32
    %164 = vector.broadcast %cst_59 : f32 to vector<8x1xf32>
    %165 = arith.mulf %164, %163 : vector<8x1xf32>
    %166 = tpu.reciprocal %165 : vector<8x1xf32> -> vector<8x1xf32>
    %167 = vector.broadcast %166 : vector<8x1xf32> to vector<8x256xf32>
    %168 = arith.mulf %157, %167 : vector<8x256xf32>
    %cst_60 = arith.constant 5.000000e-01 : f32
    %169 = vector.broadcast %cst_60 : f32 to vector<8x256xf32>
    %170 = arith.addf %168, %169 : vector<8x256xf32>
    %171 = arith.negf %170 : vector<8x256xf32>
    %172 = math.exp %171 : vector<8x256xf32>
    %cst_61 = arith.constant 1.000000e+00 : f32
    %173 = vector.broadcast %cst_61 : f32 to vector<8x256xf32>
    %174 = arith.addf %173, %172 : vector<8x256xf32>
    %175 = arith.divf %173, %174 : vector<8x256xf32>
    %176 = arith.mulf %82, %175 : vector<8x256xf32>
    %177 = arith.addf %176, %17 : vector<8x256xf32>
    %cst_62 = arith.constant 0.000000e+00 : f32
    %178 = vector.broadcast %cst_62 : f32 to vector<8x256xf32>
    %179 = arith.cmpf oge, %177, %178 : vector<8x256xf32>
    %cst_63 = arith.constant 2.000000e-01 : f32
    %180 = vector.broadcast %cst_63 : f32 to vector<8x256xf32>
    %181 = arith.mulf %180, %177 : vector<8x256xf32>
    %182 = arith.select %179, %177, %181 : vector<8x256xi1>, vector<8x256xf32>
    %c0_64 = arith.constant 0 : index
    %c0_65 = arith.constant 0 : index
    %c0_66 = arith.constant 0 : index
    %183 = vector.load %arg11[%c0_64, %c0_65, %c0_66] : memref<1x8x256xf32, #tpu.memory_space<vmem>>, vector<1x8x256xf32>
    %184 = vector.shape_cast %183 : vector<1x8x256xf32> to vector<8x256xf32>
    %185 = vector.shape_cast %182 : vector<8x256xf32> to vector<1x8x256xf32>
    tpu.vector_store %arg11[%c0_64, %c0_65, %c0_66], %185 {strides = array<i32>} : memref<1x8x256xf32, #tpu.memory_space<vmem>>, vector<1x8x256xf32>,
    return
  }
  func.func @transform_0(%arg0: i32) -> (i32, i32, i32) {
    %c0_i32 = arith.constant 0 : i32
    %c0_i32_0 = arith.constant 0 : i32
    %c0_i32_1 = arith.constant 0 : i32
    return %arg0, %c0_i32, %c0_i32_0 : i32, i32, i32
  }
  func.func @transform_1(%arg0: i32) -> (i32, i32, i32) {
    %c0_i32 = arith.constant 0 : i32
    %c0_i32_0 = arith.constant 0 : i32
    %c0_i32_1 = arith.constant 0 : i32
    return %arg0, %c0_i32, %c0_i32_0 : i32, i32, i32
  }
  func.func @transform_2(%arg0: i32) -> (i32, i32) {
    %c0_i32 = arith.constant 0 : i32
    %c0_i32_0 = arith.constant 0 : i32
    %c0_i32_1 = arith.constant 0 : i32
    return %c0_i32, %c0_i32_0 : i32, i32
  }
  func.func @transform_3(%arg0: i32) -> (i32, i32) {
    %c0_i32 = arith.constant 0 : i32
    %c0_i32_0 = arith.constant 0 : i32
    %c0_i32_1 = arith.constant 0 : i32
    return %c0_i32, %c0_i32_0 : i32, i32
  }
  func.func @transform_4(%arg0: i32) -> (i32, i32) {
    %c0_i32 = arith.constant 0 : i32
    %c0_i32_0 = arith.constant 0 : i32
    %c0_i32_1 = arith.constant 0 : i32
    return %c0_i32, %c0_i32_0 : i32, i32
  }
  func.func @transform_5(%arg0: i32) -> (i32, i32) {
    %c0_i32 = arith.constant 0 : i32
    %c0_i32_0 = arith.constant 0 : i32
    %c0_i32_1 = arith.constant 0 : i32
    return %c0_i32, %c0_i32_0 : i32, i32
  }
  func.func @transform_6(%arg0: i32) -> (i32, i32) {
    %c0_i32 = arith.constant 0 : i32
    %c0_i32_0 = arith.constant 0 : i32
    %c0_i32_1 = arith.constant 0 : i32
    return %c0_i32, %c0_i32_0 : i32, i32
  }
  func.func @transform_7(%arg0: i32) -> (i32, i32) {
    %c0_i32 = arith.constant 0 : i32
    %c0_i32_0 = arith.constant 0 : i32
    %c0_i32_1 = arith.constant 0 : i32
    return %c0_i32, %c0_i32_0 : i32, i32
  }
  func.func @transform_8(%arg0: i32) -> (i32, i32) {
    %c0_i32 = arith.constant 0 : i32
    %c0_i32_0 = arith.constant 0 : i32
    %c0_i32_1 = arith.constant 0 : i32
    return %c0_i32, %c0_i32_0 : i32, i32
  }
  func.func @transform_9(%arg0: i32) -> (i32, i32) {
    %c0_i32 = arith.constant 0 : i32
    %c0_i32_0 = arith.constant 0 : i32
    %c0_i32_1 = arith.constant 0 : i32
    return %c0_i32, %c0_i32_0 : i32, i32
  }
  func.func @transform_10(%arg0: i32) -> (i32, i32, i32) {
    %c0_i32 = arith.constant 0 : i32
    %c0_i32_0 = arith.constant 0 : i32
    %c0_i32_1 = arith.constant 0 : i32
    return %arg0, %c0_i32, %c0_i32_0 : i32, i32, i32
  }
}

</mosaic_0001>

<bundles_post_ra>
// kernel: tpu_custom_call.1
= control target key start
LH: loop header
LB: loop body
LE: loop exit
PB: predicated region body
PF: predicated region fallthrough
CT: control target
= control target key end

     0   :  { %15 = vsyncpa [#allocation3], 0  ;;  %s1891_s0 = inlined_call_operand.vmem [shape: f32[2,8,256], index: 0, kind: input, shape index: {}]   ;;  %s1892_s1 = inlined_call_operand.vmem [shape: f32[2,8,1], index: 1, kind: input, shape index: {}]   ;;  %s1893_s2 = inlined_call_operand.vmem [shape: f32[8,256], index: 2, kind: input, shape index: {}]   ;;  %s1894_s3 = inlined_call_operand.vmem [shape: bf16[8,72], index: 3, kind: input, shape index: {}]   ;;  %s1895_s4 = inlined_call_operand.vmem [shape: bf16[8,72], index: 4, kind: input, shape index: {}]   ;;  %s1896_s5 = inlined_call_operand.vmem [shape: f32[8,1], index: 5, kind: input, shape index: {}]   ;;  %s1897_s6 = inlined_call_operand.vmem [shape: bf16[8,72], index: 6, kind: input, shape index: {}]   ;;  %s1898_s7 = inlined_call_operand.vmem [shape: f32[8,1], index: 7, kind: input, shape index: {}]   ;;  %s1899_s8 = inlined_call_operand.vmem [shape: bf16[8,72], index: 8, kind: input, shape index: {}]   ;;  %s1900_s9 = inlined_call_operand.vmem [shape: f32[8,1], index: 9, kind: input, shape index: {}]   ;;  %s1901_s10 = inlined_call_operand.hbm [shape: f32[2,8,256], index: 10, kind: output, shape index: {}]  }
   0x1   :  { %17 = vsyncpa [#allocation3 + $0x1], 0  ;;  %s1341_s13 = smov 0   ;;  %s1343_s14 = smov 0  }
   0x2   :  { %s1345_s15 = smov 0   ;;  %s1347_s16 = smov 0  }
   0x3 LB: > { %s1362_s17 = sadd.s32 4294967295, %s1274_s16   ;;  %s1127_s18 = sadd.s32 4294967294, %s1274_s16   ;;  %s1274_s16 = sphi %s1347_s16, %s1913_s16   ;;  %s1270_s15 = sphi %s1345_s15, %s1912_s15   ;;  %s1266_s14 = sphi %s1343_s14, %s1911_s14   ;;  %s1262_s13 = sphi %s1341_s13, %s1910_s13  }
   0x4   : > { %s1366_s19 = sadd.s32 1, %s1274_s16   ;;  %s250_s20 = sadd.s32 1, %s1270_s15 }
   0x5   : > { %s247_s21 = ssub.s32 %s1274_s16, %s1366_s19  ;;  %p260_p0 = scmp.ne.s32.totalorder %s1270_s15, %s1266_s14 }
   0x6   : > { %p248_p1 = scmp.eq.s32.totalorder %s247_s21, 0  ;;  %p261_p2 = scmp.eq.s32.totalorder %s1362_s17, 1 }
   0x7   : > { %p266_p3 = scmp.ne.s32.totalorder %s1266_s14, %s1262_s13  ;;  %p267_p4 = scmp.eq.s32.totalorder %s1127_s18, 1 }
   0x8   : > { %s1377_s22 = scalar_select %p248_p1, %s1270_s15, %s250_s20  }
   0x9   : > { %p1379_p5 = por %p261_p2, %p260_p0  ;;  %p1383_p6 = por %p267_p4, %p266_p3 }
   0xa   : > { %p1130_p7 = scmp.ge.s32.totalorder %s1274_s16, 1  ;;  %p324_p8 = scmp.lt.s32.totalorder %s1274_s16, 3 }
   0xc   : > { %p325_p9 = pnand %p1130_p7, %p324_p8 }
   0xd   : > { %p366_p10 = scmp.lt.s32.totalorder (!%p325_p9), %s1362_s17, 1  ;;  %s1276_s30 = smov (!%p325_p9), 16   ;;  %v1282_v2 = vmov (!%p325_p9), 0   ;;  %v392_v4 = vlaneseq (!%p325_p9)  ;;  %v1450_v9 = vld [vmem:[%s1893_s2] sm:$0xff] (!%p325_p9)  ;;  %v1455_v10 = vld [vmem:[%s1893_s2 + $0x8] sm:$0xff] (!%p325_p9)  ;;  %vm545_vm8 = vcmask (!%p325_p9), 1043456  }
   0xe   : > { %328 = sbr.rel (%p325_p9) target bundleno = 1869 (0x74d), region = 60  ;;  %s1277_s11 = smov (!%p325_p9), 17   ;;  %584 = vmatprep.mubr.bf16.mxu0 (!%p325_p9), %v1282_v2  ;;  %1200 = vset.pattern.permute.xlu0 (!%p325_p9), %v1282_v2  ;;  %vm541_vm9 = vcmask (!%p325_p9), 588800  }
   0xf   : > { %s1278_s12 = smov (!%p325_p9), 15   ;;  %s1279_s18 = smov (!%p325_p9), 1   ;;  %719 = vmatprep.mubr.bf16.mxu1 (!%p325_p9), %v1282_v2  ;;  %1201 = vset.pattern.permute.xlu1 (!%p325_p9), %v1282_v2  ;;  %v1441_v5 = vshrl.u32 (!%p325_p9), %v392_v4, 7  ;;  %v1443_v6 = vand.u32 (!%p325_p9), 127, %v392_v4 }
  0x10   : > { %s1904_s20 = smov (!%p325_p9), 127   ;;  %s1902_s21 = smov (!%p325_p9), 113  }
  0x11   : > { %v416_v7 = vsub.s32 (!%p325_p9), 1, %v1441_v5  ;;  %v399_v8 = vsub.s32 (!%p325_p9), 0, %v1441_v5  ;;  %vm411_vm0 = vcmp.lt.s32.totalorder (!%p325_p9), %v1443_v6, 16  ;;  %vm394_vm1 = vcmp.lt.s32.totalorder (!%p325_p9), %v1443_v6, 17  ;;  %s1909_s28 = smov (!%p325_p9), 113  }
  0x12   : > { %v433_v19 = vsub.s32 (!%p325_p9), 2, %v1441_v5  ;;  %v450_v20 = vsub.s32 (!%p325_p9), 3, %v1441_v5  ;;  %vm428_vm2 = vcmp.lt.s32.totalorder (!%p325_p9), %v1443_v6, 15  ;;  %vm445_vm3 = vcmp.lt.s32.totalorder (!%p325_p9), %v1443_v6, 1 }
  0x13   : > { %v1460_v13 = vrot.slane (!%p325_p9), %v1450_v9, %v416_v7  ;;  %v1463_v14 = vrot.slane (!%p325_p9), %v1450_v9, %v399_v8  ;;  %v1466_v15 = vrot.slane (!%p325_p9), %v1455_v10, %v399_v8  ;;  %v1469_v16 = vrot.slane (!%p325_p9), %v1455_v10, %v416_v7 }
  0x14   : > { %v467_v33 = vsub.s32 (!%p325_p9), 4, %v1441_v5  ;;  %v1489_v34 = vrot.slane (!%p325_p9), %v1450_v9, %v433_v19  ;;  %v1492_v35 = vrot.slane (!%p325_p9), %v1455_v10, %v433_v19  ;;  %v1495_v36 = vrot.slane (!%p325_p9), %v1450_v9, %v450_v20 }
  0x15   : > { %s1391_s25 = scalar_select %p366_p10, %s1362_s17, 1  ;;  %v1498_v37 = vrot.slane %v1455_v10, %v450_v20  ;;  %vm462_vm4 = vcmp.lt.s32.totalorder %v1443_v6, 127  ;;  %v484_v56 = vsub.s32 5, %v1441_v5  ;;  %v501_v59 = vsub.s32 6, %v1441_v5 }
  0x16   : > { %v1510_v44 = vrot.slane %v1450_v9, %v467_v33  ;;  %v1513_v45 = vrot.slane %v1455_v10, %v467_v33  ;;  %vm479_vm5 = vcmp.lt.s32.totalorder %v1443_v6, 113  ;;  %v518_v4 = vsub.s32 7, %v1441_v5 }
  0x17   : > { %s1150_s26 = sshll.u32 %s1391_s25, 4  ;;  %s1134_s27 = sshll.u32 %s1391_s25, 3  ;;  %v1535_v7 = vrot.slane %v1455_v10, %v484_v56  ;;  %vm496_vm6 = vcmp.lt.s32.totalorder %v1443_v6, 112  ;;  %v1539_v8 = vrot.slane %v1450_v9, %v501_v59  ;;  %vm513_vm7 = vcmp.lt.s32.totalorder %v1443_v6, 111 }
  0x18   : > { %s370_s29 = scalar_lea.vmem %s1891_s0, %s1150_s26  ;;  %s1283_s26 = smov 112  }
  0x19   : > { %v1397_v0 = vld [vmem:[%s370_s29] sm:$0xff]  ;;  %v1403_v1 = vld [vmem:[%s370_s29 + $0x8] sm:$0xff] }
  0x1a   : > { %407 = vrot.lane.b32.xlu1 %v1397_v0, %s1276_s30  ;;  %388 = vrot.lane.b32.xlu0 %v1397_v0, %s1277_s11 }
  0x1e   : > { %409 = vrot.lane.b32.xlu1 %v1403_v1, %s1276_s30  ;;  %390 = vrot.lane.b32.xlu0 %v1403_v1, %s1277_s11 }
  0x22   : > { %426 = vrot.lane.b32.xlu1 %v1403_v1, %s1278_s12  ;;  %424 = vrot.lane.b32.xlu0 %v1397_v0, %s1278_s12 }
  0x26   : > { %443 = vrot.lane.b32.xlu1 %v1403_v1, %s1279_s18  ;;  %441 = vrot.lane.b32.xlu0 %v1397_v0, %s1279_s18 }
  0x2a   : > { %460 = vrot.lane.b32.xlu1 %v1403_v1, %s1904_s20  ;;  %458 = vrot.lane.b32.xlu0 %v1397_v0, %s1904_s20  ;;  %s1284_s20 = smov 111  }
  0x2e   : > { %477 = vrot.lane.b32.xlu1 %v1403_v1, %s1902_s21  ;;  %475 = vrot.lane.b32.xlu0 %v1397_v0, %s1902_s21  ;;  %s374_s21 = scalar_lea.vmem %s1892_s1, %s1134_s27  ;;  %s1908_s27 = smov 127  }
  0x2f   : > { %v387_v3 = vld [vmem:[%s374_s21] sm:$0xff] }
  0x32   : > { %494 = vrot.lane.b32.xlu1 %v1403_v1, %s1283_s26  ;;  %492 = vrot.lane.b32.xlu0 %v1397_v0, %s1283_s26 }
  0x36   : > { %511 = vrot.lane.b32.xlu1 %v1403_v1, %s1284_s20  ;;  %509 = vrot.lane.b32.xlu0 %v1397_v0, %s1284_s20 }
  0x3a   : > { %538 = vperm.xlu0 %1200, %v387_v3   ;;  %v1531_v3 = vrot.slane %v1450_v9, %v484_v56 }
  0x8c   : > { %v408_v11 = vpop.permute.xlu1 %407  ;;  %v389_v12 = vpop.permute.xlu0 %388 }
  0x90   : > { %v410_v17 = vpop.permute.xlu1 %409  ;;  %v391_v18 = vpop.permute.xlu0 %390 }
  0x91   : > { %v412_v21 = vsel %vm411_vm0, %v408_v11, %v410_v17  ;;  %v413_v22 = vsel %vm411_vm0, %v410_v17, %v408_v11  ;;  %v395_v23 = vsel %vm394_vm1, %v389_v12, %v391_v18  ;;  %v396_v24 = vsel %vm394_vm1, %v391_v18, %v389_v12 }
  0x92   : > { %v422_v25 = vmul.f32 %v1460_v13, %v413_v22  ;;  %v405_v26 = vmul.f32 %v1463_v14, %v396_v24  ;;  %v406_v27 = vmul.f32 %v1466_v15, %v395_v23  ;;  %v423_v28 = vmul.f32 %v1469_v16, %v412_v21 }
  0x93   : > { %v1542_v11 = vrot.slane %v1455_v10, %v501_v59  ;;  %v1554_v21 = vrot.slane %v1450_v9, %v518_v4  ;;  %v1557_v22 = vrot.slane %v1455_v10, %v518_v4 }
  0x94   : > { %v427_v29 = vpop.permute.xlu1 %426  ;;  %v425_v30 = vpop.permute.xlu0 %424  ;;  %v527_v31 = vpack.c.bf16 %v423_v28, %v406_v27  ;;  %v526_v32 = vpack.c.bf16 %v422_v25, %v405_v26 }
  0x95   : > { %v429_v38 = vsel %vm428_vm2, %v425_v30, %v427_v29  ;;  %v430_v39 = vsel %vm428_vm2, %v427_v29, %v425_v30 }
  0x96   : > { %552 = vmatprep.subr.bf16.mxu0 %v527_v31  ;;  %v439_v46 = vmul.f32 %v1489_v34, %v430_v39  ;;  %v440_v47 = vmul.f32 %v1492_v35, %v429_v38 }
  0x97   : > { %553 = vmatpush1.bf16.msra.mxu0 %v526_v32 }
  0x98   : > { %v444_v40 = vpop.permute.xlu1 %443  ;;  %v442_v41 = vpop.permute.xlu0 %441 }
  0x99   : > { %v446_v42 = vsel %vm445_vm3, %v442_v41, %v444_v40  ;;  %v447_v43 = vsel %vm445_vm3, %v444_v40, %v442_v41  ;;  %v378_v40 = vld [vmem:[%s1894_s3] sm:$0xf] }
  0x9a   : > { %v456_v48 = vmul.f32 %v1495_v36, %v447_v43  ;;  %v457_v49 = vmul.f32 %v1498_v37, %v446_v42 }
  0x9c   : > { %v461_v50 = vpop.permute.xlu1 %460  ;;  %v459_v51 = vpop.permute.xlu0 %458  ;;  %v529_v52 = vpack.c.bf16 %v457_v49, %v440_v47  ;;  %v528_v53 = vpack.c.bf16 %v456_v48, %v439_v46 }
  0x9d   : > { %v463_v54 = vsel %vm462_vm4, %v459_v51, %v461_v50  ;;  %v464_v55 = vsel %vm462_vm4, %v461_v50, %v459_v51 }
  0x9e   : > { %v473_v57 = vmul.f32 %v1510_v44, %v463_v54  ;;  %v474_v58 = vmul.f32 %v1513_v45, %v464_v55  ;;  %554 = vmatprep.subr.bf16.mxu0 %v529_v52  ;;  %v380_v54 = vld [vmem:[%s1896_s5] sm:$0xff] }
  0x9f   : > { %555 = vmatpush1.bf16.msra.mxu0 %v528_v53 }
  0xa0   : > { %v478_v60 = vpop.permute.xlu1 %477  ;;  %v476_v61 = vpop.permute.xlu0 %475  ;;  %v531_v62 = vpack.c.bf16 %v474_v58, %v1403_v1  ;;  %v530_v63 = vpack.c.bf16 %v473_v57, %v1397_v0 }
  0xa1   : > { %v480_v12 = vsel %vm479_vm5, %v476_v61, %v478_v60  ;;  %v481_v17 = vsel %vm479_vm5, %v478_v60, %v476_v61 }
  0xa2   : > { %556 = vmatprep.subr.bf16.mxu0 %v531_v62  ;;  %v490_v23 = vmul.f32 %v1531_v3, %v480_v12  ;;  %v491_v24 = vmul.f32 %v1535_v7, %v481_v17 }
  0xa3   : > { %557 = vmatpush1.bf16.msra.mxu0 %v530_v63 }
  0xa4   : > { %v495_v5 = vpop.permute.xlu1 %494  ;;  %v493_v18 = vpop.permute.xlu0 %492 }
  0xa5   : > { %v497_v19 = vsel %vm496_vm6, %v493_v18, %v495_v5  ;;  %v498_v20 = vsel %vm496_vm6, %v495_v5, %v493_v18 }
  0xa6   : > { %v507_v25 = vmul.f32 %v1539_v8, %v497_v19  ;;  %v508_v26 = vmul.f32 %v1542_v11, %v498_v20 }
  0xa8   : > { %v512_v27 = vpop.permute.xlu1 %511  ;;  %v510_v28 = vpop.permute.xlu0 %509  ;;  %v533_v29 = vpack.c.bf16 %v508_v26, %v491_v24  ;;  %v532_v30 = vpack.c.bf16 %v507_v25, %v490_v23 }
  0xa9   : > { %v514_v31 = vsel %vm513_vm7, %v510_v28, %v512_v27  ;;  %v515_v9 = vsel %vm513_vm7, %v512_v27, %v510_v28 }
  0xaa   : > { %v524_v10 = vmul.f32 %v1554_v21, %v514_v31  ;;  %v525_v32 = vmul.f32 %v1557_v22, %v515_v9  ;;  %558 = vmatprep.subr.bf16.mxu0 %v533_v29 }
  0xab   : > { %559 = vmatpush1.bf16.msra.mxu0 %v532_v30 }
  0xac   : > { %v534_v33 = vpack.c.bf16 %v524_v10, %v524_v10  ;;  %v535_v38 = vpack.c.bf16 %v525_v32, %v525_v32 }
  0xae   : > { %1135 = vmatprep.subr.msk.bf16.mxu0 %vm545_vm8, %v535_v38  ;;  %v547_v39 = vsel %vm545_vm8, %v534_v33, 0 }
  0xaf   : > { %561 = vmatpush1.bf16.msra.mxu0 %v547_v39 }
  0xb2   : > { %1136 = vmatmul.mubr.msk.bf16.vlgmr.msra.gmra.mrb[0].mxu0 %vm541_vm9, %v378_v40 }
  0xb3   : > { %848 = vmatprep.mubr.bf16.mxu0 %v1282_v2 }
  0xb9   : > { %v539_v41 = vpop.permute.xlu0 %538 }
 0x185   : > { %v586_v42 = vpop.f32.mrb[0].mxu0 }
 0x186   : > { %v587_v43 = vadd.f32 %v586_v42, %v539_v41  ;;  %v588_v46 = vpop.f32.mrb[1].mxu0 }
 0x187   : > { %v589_v47 = vadd.f32 %v588_v46, %v539_v41  ;;  %v590_v48 = vpop.f32.mrb[2].mxu0 }
 0x188   : > { %vm593_vm10 = vcmp.ge.f32.partialorder %v587_v43, 0.0  ;;  %v595_v49 = vmul.f32 0.2, %v587_v43  ;;  %v591_v50 = vpop.f32.mrb[3].mxu0 }
 0x189   : > { %v596_v52 = vmul.f32 0.2, %v589_v47  ;;  %vm594_vm11 = vcmp.ge.f32.partialorder %v589_v47, 0.0 }
 0x18a   : > { %v1576_v51 = vsel %vm593_vm10, %v587_v43, %v595_v49 }
 0x18b   : > { %607 = vrot.lane.b32.xlu0 %v1576_v51, %s1276_s30  ;;  %599 = vrot.lane.b32.xlu1 %v1576_v51, %s1277_s11  ;;  %v598_v53 = vsel %vm594_vm11, %v589_v47, %v596_v52 }
 0x18f   : > { %615 = vrot.lane.b32.xlu0 %v1576_v51, %s1278_s12  ;;  %601 = vrot.lane.b32.xlu1 %v598_v53, %s1277_s11 }
 0x193   : > { %623 = vrot.lane.b32.xlu0 %v1576_v51, %s1279_s18  ;;  %609 = vrot.lane.b32.xlu1 %v598_v53, %s1276_s30 }
 0x197   : > { %631 = vrot.lane.b32.xlu0 %v1576_v51, %s1908_s27  ;;  %617 = vrot.lane.b32.xlu1 %v598_v53, %s1278_s12 }
 0x19b   : > { %639 = vrot.lane.b32.xlu0 %v1576_v51, %s1909_s28  ;;  %625 = vrot.lane.b32.xlu1 %v598_v53, %s1279_s18 }
 0x19f   : > { %647 = vrot.lane.b32.xlu0 %v1576_v51, %s1283_s26  ;;  %633 = vrot.lane.b32.xlu1 %v598_v53, %s1908_s27 }
 0x1a3   : > { %655 = vrot.lane.b32.xlu0 %v1576_v51, %s1284_s20  ;;  %641 = vrot.lane.b32.xlu1 %v598_v53, %s1909_s28 }
 0x1a7   : > { %675 = vperm.xlu0 %1200, %v380_v54   ;;  %649 = vrot.lane.b32.xlu1 %v598_v53, %s1283_s26 }
 0x1ab   : > { %657 = vrot.lane.b32.xlu1 %v598_v53, %s1284_s20 }
 0x1fd   : > { %v608_v55 = vpop.permute.xlu0 %607  ;;  %v600_v56 = vpop.permute.xlu1 %599 }
 0x201   : > { %v616_v57 = vpop.permute.xlu0 %615  ;;  %v602_v58 = vpop.permute.xlu1 %601 }
 0x202   : > { %v603_v59 = vsel %vm394_vm1, %v600_v56, %v602_v58  ;;  %v604_v60 = vsel %vm394_vm1, %v602_v58, %v600_v56 }
 0x203   : > { %v605_v12 = vmul.f32 %v604_v60, %v1463_v14  ;;  %v606_v5 = vmul.f32 %v603_v59, %v1466_v15 }
 0x205   : > { %v624_v61 = vpop.permute.xlu0 %623  ;;  %v610_v62 = vpop.permute.xlu1 %609 }
 0x206   : > { %v611_v63 = vsel %vm411_vm0, %v608_v55, %v610_v62  ;;  %v612_v4 = vsel %vm411_vm0, %v610_v62, %v608_v55 }
 0x207   : > { %v613_v17 = vmul.f32 %v612_v4, %v1460_v13  ;;  %v614_v18 = vmul.f32 %v611_v63, %v1469_v16 }
 0x209   : > { %v618_v19 = vpop.permute.xlu1 %617  ;;  %v664_v20 = vpack.c.bf16 %v614_v18, %v606_v5  ;;  %v663_v23 = vpack.c.bf16 %v613_v17, %v605_v12  ;;  %v632_v24 = vpop.permute.xlu0 %631 }
 0x20a   : > { %v619_v25 = vsel %vm428_vm2, %v616_v57, %v618_v19  ;;  %v620_v26 = vsel %vm428_vm2, %v618_v19, %v616_v57 }
 0x20b   : > { %687 = vmatprep.subr.bf16.mxu1 %v664_v20  ;;  %v621_v30 = vmul.f32 %v620_v26, %v1489_v34  ;;  %v622_v31 = vmul.f32 %v619_v25, %v1492_v35  ;;  %v379_v20 = vld [vmem:[%s1895_s4] sm:$0xf] }
 0x20c   : > { %688 = vmatpush1.bf16.msra.mxu1 %v663_v23 }
 0x20d   : > { %v626_v27 = vpop.permute.xlu1 %625  ;;  %v640_v32 = vpop.permute.xlu0 %639 }
 0x20e   : > { %v627_v28 = vsel %vm445_vm3, %v624_v61, %v626_v27  ;;  %v628_v29 = vsel %vm445_vm3, %v626_v27, %v624_v61 }
 0x20f   : > { %v629_v9 = vmul.f32 %v628_v29, %v1495_v36  ;;  %v630_v10 = vmul.f32 %v627_v28, %v1498_v37 }
 0x211   : > { %v634_v33 = vpop.permute.xlu1 %633  ;;  %v666_v38 = vpack.c.bf16 %v630_v10, %v622_v31  ;;  %v665_v39 = vpack.c.bf16 %v629_v9, %v621_v30  ;;  %v648_v49 = vpop.permute.xlu0 %647 }
 0x212   : > { %v635_v40 = vsel %vm462_vm4, %v632_v24, %v634_v33  ;;  %v636_v41 = vsel %vm462_vm4, %v634_v33, %v632_v24 }
 0x213   : > { %v637_v42 = vmul.f32 %v635_v40, %v1510_v44  ;;  %v638_v43 = vmul.f32 %v636_v41, %v1513_v45  ;;  %689 = vmatprep.subr.bf16.mxu1 %v666_v38 }
 0x214   : > { %690 = vmatpush1.bf16.msra.mxu1 %v665_v39 }
 0x215   : > { %v642_v46 = vpop.permute.xlu1 %641  ;;  %v668_v47 = vpack.c.bf16 %v638_v43, %v598_v53  ;;  %v667_v48 = vpack.c.bf16 %v637_v42, %v1576_v51  ;;  %v656_v59 = vpop.permute.xlu0 %655 }
 0x216   : > { %v643_v50 = vsel %vm479_vm5, %v640_v32, %v642_v46  ;;  %v644_v52 = vsel %vm479_vm5, %v642_v46, %v640_v32 }
 0x217   : > { %691 = vmatprep.subr.bf16.mxu1 %v668_v47  ;;  %v645_v53 = vmul.f32 %v643_v50, %v1531_v3  ;;  %v646_v51 = vmul.f32 %v644_v52, %v1535_v7 }
 0x218   : > { %692 = vmatpush1.bf16.msra.mxu1 %v667_v48 }
 0x219   : > { %v650_v54 = vpop.permute.xlu1 %649 }
 0x21a   : > { %v651_v55 = vsel %vm496_vm6, %v648_v49, %v650_v54  ;;  %v652_v56 = vsel %vm496_vm6, %v650_v54, %v648_v49 }
 0x21b   : > { %v653_v57 = vmul.f32 %v651_v55, %v1539_v8  ;;  %v654_v58 = vmul.f32 %v652_v56, %v1542_v11 }
 0x21d   : > { %v658_v60 = vpop.permute.xlu1 %657  ;;  %v670_v61 = vpack.c.bf16 %v654_v58, %v646_v51  ;;  %v669_v62 = vpack.c.bf16 %v653_v57, %v645_v53 }
 0x21e   : > { %v659_v63 = vsel %vm513_vm7, %v656_v59, %v658_v60  ;;  %v660_v4 = vsel %vm513_vm7, %v658_v60, %v656_v59 }
 0x21f   : > { %v661_v12 = vmul.f32 %v659_v63, %v1554_v21  ;;  %v662_v17 = vmul.f32 %v660_v4, %v1557_v22  ;;  %693 = vmatprep.subr.bf16.mxu1 %v670_v61 }
 0x220   : > { %694 = vmatpush1.bf16.msra.mxu1 %v669_v62 }
 0x221   : > { %v671_v5 = vpack.c.bf16 %v661_v12, %v661_v12  ;;  %v672_v18 = vpack.c.bf16 %v662_v17, %v662_v17 }
 0x223   : > { %1137 = vmatprep.subr.msk.bf16.mxu1 %vm545_vm8, %v672_v18  ;;  %v682_v19 = vsel %vm545_vm8, %v671_v5, 0 }
 0x224   : > { %696 = vmatpush1.bf16.msra.mxu1 %v682_v19 }
 0x226   : > { %v676_v23 = vpop.permute.xlu0 %675 }
 0x227   : > { %1138 = vmatmul.mubr.msk.bf16.vlgmr.msra.gmra.mrb[0].mxu1 %vm541_vm9, %v379_v20 }
 0x228   : > { %983 = vmatprep.mubr.bf16.mxu1 %v1282_v2  ;;  %v382_v2 = vld [vmem:[%s1898_s7] sm:$0xff] }
 0x2fa   : > { %v721_v24 = vpop.f32.mrb[0].mxu1 }
 0x2fb   : > { %v1661_v25 = vadd.f32 %v721_v24, %v676_v23  ;;  %v723_v26 = vpop.f32.mrb[1].mxu1 }
 0x2fc   : > { %v1663_v27 = vadd.f32 %v723_v26, %v676_v23  ;;  %v725_v28 = vpop.f32.mrb[2].mxu1 }
 0x2fd   : > { %v726_v29 = vpop.f32.mrb[3].mxu1  ;;  %728 = vrot.lane.b32.xlu1 %v1661_v25, %s1277_s11 }
 0x2fe   : > { %730 = vrot.lane.b32.xlu0 %v1663_v27, %s1277_s11 }
 0x301   : > { %736 = vrot.lane.b32.xlu1 %v1661_v25, %s1276_s30 }
 0x302   : > { %738 = vrot.lane.b32.xlu0 %v1663_v27, %s1276_s30 }
 0x305   : > { %744 = vrot.lane.b32.xlu1 %v1661_v25, %s1278_s12 }
 0x306   : > { %746 = vrot.lane.b32.xlu0 %v1663_v27, %s1278_s12 }
 0x309   : > { %752 = vrot.lane.b32.xlu1 %v1661_v25, %s1279_s18 }
 0x30a   : > { %754 = vrot.lane.b32.xlu0 %v1663_v27, %s1279_s18 }
 0x30d   : > { %760 = vrot.lane.b32.xlu1 %v1661_v25, %s1908_s27 }
 0x30e   : > { %762 = vrot.lane.b32.xlu0 %v1663_v27, %s1908_s27 }
 0x311   : > { %768 = vrot.lane.b32.xlu1 %v1661_v25, %s1909_s28 }
 0x312   : > { %770 = vrot.lane.b32.xlu0 %v1663_v27, %s1909_s28 }
 0x315   : > { %776 = vrot.lane.b32.xlu1 %v1661_v25, %s1283_s26 }
 0x316   : > { %778 = vrot.lane.b32.xlu0 %v1663_v27, %s1283_s26 }
 0x319   : > { %784 = vrot.lane.b32.xlu1 %v1661_v25, %s1284_s20 }
 0x31a   : > { %786 = vrot.lane.b32.xlu0 %v1663_v27, %s1284_s20 }
 0x31d   : > { %804 = vperm.xlu1 %1201, %v382_v2  }
 0x36f   : > { %v729_v30 = vpop.permute.xlu1 %728 }
 0x370   : > { %v731_v31 = vpop.permute.xlu0 %730 }
 0x371   : > { %v732_v9 = vsel %vm394_vm1, %v729_v30, %v731_v31  ;;  %v733_v10 = vsel %vm394_vm1, %v731_v31, %v729_v30 }
 0x372   : > { %v734_v40 = vmul.f32 %v733_v10, %v1463_v14  ;;  %v735_v41 = vmul.f32 %v732_v9, %v1466_v15 }
 0x373   : > { %v737_v32 = vpop.permute.xlu1 %736 }
 0x374   : > { %v739_v33 = vpop.permute.xlu0 %738 }
 0x375   : > { %v740_v38 = vsel %vm411_vm0, %v737_v32, %v739_v33  ;;  %v741_v39 = vsel %vm411_vm0, %v739_v33, %v737_v32 }
 0x376   : > { %v742_v42 = vmul.f32 %v741_v39, %v1460_v13  ;;  %v743_v43 = vmul.f32 %v740_v38, %v1469_v16 }
 0x377   : > { %v745_v46 = vpop.permute.xlu1 %744 }
 0x378   : > { %v792_v47 = vpack.c.bf16 %v742_v42, %v734_v40  ;;  %v747_v48 = vpop.permute.xlu0 %746  ;;  %v793_v49 = vpack.c.bf16 %v743_v43, %v735_v41 }
 0x379   : > { %v748_v50 = vsel %vm428_vm2, %v745_v46, %v747_v48  ;;  %v749_v52 = vsel %vm428_vm2, %v747_v48, %v745_v46 }
 0x37a   : > { %816 = vmatprep.subr.bf16.mxu0 %v793_v49  ;;  %v750_v51 = vmul.f32 %v749_v52, %v1489_v34  ;;  %v751_v57 = vmul.f32 %v748_v50, %v1492_v35  ;;  %v381_v50 = vld [vmem:[%s1897_s6] sm:$0xf] }
 0x37b   : > { %817 = vmatpush1.bf16.msra.mxu0 %v792_v47  ;;  %v753_v54 = vpop.permute.xlu1 %752 }
 0x37c   : > { %v755_v55 = vpop.permute.xlu0 %754 }
 0x37d   : > { %v756_v56 = vsel %vm445_vm3, %v753_v54, %v755_v55  ;;  %v757_v53 = vsel %vm445_vm3, %v755_v55, %v753_v54 }
 0x37e   : > { %v758_v58 = vmul.f32 %v757_v53, %v1495_v36  ;;  %v759_v59 = vmul.f32 %v756_v56, %v1498_v37 }
 0x37f   : > { %v761_v60 = vpop.permute.xlu1 %760 }
 0x380   : > { %v794_v61 = vpack.c.bf16 %v758_v58, %v750_v51  ;;  %v763_v62 = vpop.permute.xlu0 %762  ;;  %v795_v63 = vpack.c.bf16 %v759_v59, %v751_v57 }
 0x381   : > { %v764_v4 = vsel %vm462_vm4, %v761_v60, %v763_v62  ;;  %v765_v12 = vsel %vm462_vm4, %v763_v62, %v761_v60  ;;  %v384_v62 = vld [vmem:[%s1900_s9] sm:$0xff] }
 0x382   : > { %v766_v17 = vmul.f32 %v764_v4, %v1510_v44  ;;  %v767_v5 = vmul.f32 %v765_v12, %v1513_v45  ;;  %818 = vmatprep.subr.bf16.mxu0 %v795_v63 }
 0x383   : > { %819 = vmatpush1.bf16.msra.mxu0 %v794_v61  ;;  %v769_v18 = vpop.permute.xlu1 %768 }
 0x384   : > { %v796_v19 = vpack.c.bf16 %v766_v17, %v1661_v25  ;;  %v771_v20 = vpop.permute.xlu0 %770  ;;  %v797_v23 = vpack.c.bf16 %v767_v5, %v1663_v27 }
 0x385   : > { %v772_v24 = vsel %vm479_vm5, %v769_v18, %v771_v20  ;;  %v773_v26 = vsel %vm479_vm5, %v771_v20, %v769_v18 }
 0x386   : > { %820 = vmatprep.subr.bf16.mxu0 %v797_v23  ;;  %v774_v31 = vmul.f32 %v772_v24, %v1531_v3  ;;  %v775_v9 = vmul.f32 %v773_v26, %v1535_v7 }
 0x387   : > { %821 = vmatpush1.bf16.msra.mxu0 %v796_v19  ;;  %v777_v28 = vpop.permute.xlu1 %776 }
 0x388   : > { %v779_v29 = vpop.permute.xlu0 %778 }
 0x389   : > { %v780_v2 = vsel %vm496_vm6, %v777_v28, %v779_v29  ;;  %v781_v30 = vsel %vm496_vm6, %v779_v29, %v777_v28 }
 0x38a   : > { %v782_v10 = vmul.f32 %v780_v2, %v1539_v8  ;;  %v783_v32 = vmul.f32 %v781_v30, %v1542_v11 }
 0x38b   : > { %v785_v33 = vpop.permute.xlu1 %784 }
 0x38c   : > { %v798_v38 = vpack.c.bf16 %v782_v10, %v774_v31  ;;  %v787_v39 = vpop.permute.xlu0 %786  ;;  %v799_v40 = vpack.c.bf16 %v783_v32, %v775_v9 }
 0x38d   : > { %v788_v41 = vsel %vm513_vm7, %v785_v33, %v787_v39  ;;  %v789_v42 = vsel %vm513_vm7, %v787_v39, %v785_v33 }
 0x38e   : > { %v790_v43 = vmul.f32 %v788_v41, %v1554_v21  ;;  %v791_v46 = vmul.f32 %v789_v42, %v1557_v22  ;;  %822 = vmatprep.subr.bf16.mxu0 %v799_v40 }
 0x38f   : > { %823 = vmatpush1.bf16.msra.mxu0 %v798_v38 }
 0x390   : > { %v800_v47 = vpack.c.bf16 %v790_v43, %v790_v43  ;;  %v801_v48 = vpack.c.bf16 %v791_v46, %v791_v46 }
 0x392   : > { %1139 = vmatprep.subr.msk.bf16.mxu0 %vm545_vm8, %v801_v48  ;;  %v811_v49 = vsel %vm545_vm8, %v800_v47, 0 }
 0x393   : > { %825 = vmatpush1.bf16.msra.mxu0 %v811_v49 }
 0x396   : > { %1140 = vmatmul.mubr.msk.bf16.vlgmr.msra.gmra.mrb[4].mxu0 %vm541_vm9, %v381_v50 }
 0x39c   : > { %v805_v52 = vpop.permute.xlu1 %804 }
 0x469   : > { %v850_v54 = vpop.f32.mrb[4].mxu0 }
 0x46a   : > { %v851_v55 = vadd.f32 %v850_v54, %v805_v52  ;;  %v852_v56 = vpop.f32.mrb[5].mxu0 }
 0x46b   : > { %v853_v53 = vadd.f32 %v852_v56, %v805_v52  ;;  %v854_v51 = vpop.f32.mrb[6].mxu0 }
 0x46c   : > { %vm857_vm12 = vcmp.ge.f32.partialorder %v851_v55, 0.0  ;;  %v859_v57 = vmul.f32 0.1, %v851_v55  ;;  %v855_v58 = vpop.f32.mrb[7].mxu0 }
 0x46d   : > { %vm858_vm13 = vcmp.ge.f32.partialorder %v853_v53, 0.0  ;;  %v860_v59 = vmul.f32 0.1, %v853_v53 }
 0x46e   : > { %v1756_v60 = vsel %vm857_vm12, %v851_v55, %v859_v57 }
 0x46f   : > { %v862_v61 = vsel %vm858_vm13, %v853_v53, %v860_v59  ;;  %863 = vrot.lane.b32.xlu0 %v1756_v60, %s1277_s11 }
 0x470   : > { %865 = vrot.lane.b32.xlu1 %v862_v61, %s1277_s11 }
 0x473   : > { %871 = vrot.lane.b32.xlu0 %v1756_v60, %s1276_s30 }
 0x474   : > { %873 = vrot.lane.b32.xlu1 %v862_v61, %s1276_s30 }
 0x477   : > { %879 = vrot.lane.b32.xlu0 %v1756_v60, %s1278_s12 }
 0x478   : > { %881 = vrot.lane.b32.xlu1 %v862_v61, %s1278_s12  ;;  %s1285_s12 = smov [#allocation2]  }
 0x47b   : > { %887 = vrot.lane.b32.xlu0 %v1756_v60, %s1279_s18 }
 0x47c   : > { %889 = vrot.lane.b32.xlu1 %v862_v61, %s1279_s18  ;;  %s1216_s18 = sshll.u32 %s1285_s12, 4  ;;  %s1217_s18 = int_to_ptr.vmem [resolvable:$false] %s1216_s18 }
 0x47f   : > { %895 = vrot.lane.b32.xlu0 %v1756_v60, %s1908_s27 }
 0x480   : > { %897 = vrot.lane.b32.xlu1 %v862_v61, %s1908_s27  ;;  %s1151_s27 = sshll.u32 %s1362_s17, 8 }
 0x481   : > { %s1849_s30 = scalar_lea.hbm %s1901_s10, %s1151_s27 }
 0x483   : > { %903 = vrot.lane.b32.xlu0 %v1756_v60, %s1909_s28 }
 0x484   : > { %905 = vrot.lane.b32.xlu1 %v862_v61, %s1909_s28 }
 0x487   : > { %911 = vrot.lane.b32.xlu0 %v1756_v60, %s1283_s26 }
 0x488   : > { %913 = vrot.lane.b32.xlu1 %v862_v61, %s1283_s26 }
 0x48b   : > { %919 = vrot.lane.b32.xlu0 %v1756_v60, %s1284_s20 }
 0x48c   : > { %921 = vrot.lane.b32.xlu1 %v862_v61, %s1284_s20  ;;  %s363_s20 = sand.u32 1, %s1266_s14  }
 0x48d   : > { %s1131_s26 = sshll.u32 %s363_s20, 4  ;;  %s1042_s17 = scalar_lea.sflag [#allocation3], %s363_s20 }
 0x48e   : > { %s365_s28 = scalar_lea.vmem [#allocation2], %s1131_s26  ;;  %s1218_s26 = scalar_lea.vmem %s1217_s18, 512 }
 0x48f   : > { %939 = vperm.xlu0 %1200, %v384_v62   ;;  %s1056_s25 = sshll.u32 %s365_s28, 4  ;;  %s1851_s25 = int_to_ptr.vmem [resolvable:$true] %s1056_s25 }
 0x490   : > { %s1212_s11 = scalar_lea.vmem %s1851_s25, 256  ;;  %p1219_p0 = scmp.lt.s32.totalorder %s1851_s25, %s1217_s18 }
 0x491   : > { %p1213_p11 = scmp.ne.s32.totalorder %s1851_s25, %s1212_s11  ;;  %p1220_p1 = scmp.lt.s32.totalorder %s1218_s26, %s1212_s11 }
 0x493   : > { %p1214_p12 = pnand %p1213_p11, %p1379_p5  ;;  %p1221_p2 = por %p1220_p1, %p1219_p0 }
 0x495   : > { %p1215_p13 = pneg %p1214_p12 }
 0x497   : > { %p1222_p3 = pnand %p1221_p2, %p1215_p13 }
 0x4e1   : > { %v864_v63 = vpop.permute.xlu0 %863 }
 0x4e2   : > { %v866_v4 = vpop.permute.xlu1 %865 }
 0x4e3   : > { %v867_v12 = vsel %vm394_vm1, %v864_v63, %v866_v4  ;;  %v868_v17 = vsel %vm394_vm1, %v866_v4, %v864_v63 }
 0x4e4   : > { %v869_v23 = vmul.f32 %v868_v17, %v1463_v14  ;;  %v870_v24 = vmul.f32 %v867_v12, %v1466_v15  ;;  %v383_v12 = vld [vmem:[%s1899_s8] sm:$0xf] }
 0x4e5   : > { %v872_v5 = vpop.permute.xlu0 %871 }
 0x4e6   : > { %v874_v18 = vpop.permute.xlu1 %873 }
 0x4e7   : > { %v875_v19 = vsel %vm411_vm0, %v872_v5, %v874_v18  ;;  %v876_v20 = vsel %vm411_vm0, %v874_v18, %v872_v5 }
 0x4e8   : > { %v877_v26 = vmul.f32 %v876_v20, %v1460_v13  ;;  %v878_v28 = vmul.f32 %v875_v19, %v1469_v16 }
 0x4e9   : > { %v880_v29 = vpop.permute.xlu0 %879 }
 0x4ea   : > { %v927_v2 = vpack.c.bf16 %v877_v26, %v869_v23  ;;  %v882_v30 = vpop.permute.xlu1 %881  ;;  %v928_v31 = vpack.c.bf16 %v878_v28, %v870_v24 }
 0x4eb   : > { %v883_v9 = vsel %vm428_vm2, %v880_v29, %v882_v30  ;;  %v884_v10 = vsel %vm428_vm2, %v882_v30, %v880_v29 }
 0x4ec   : > { %951 = vmatprep.subr.bf16.mxu1 %v928_v31  ;;  %v885_v16 = vmul.f32 %v884_v10, %v1489_v34  ;;  %v886_v33 = vmul.f32 %v883_v9, %v1492_v35 }
 0x4ed   : > { %952 = vmatpush1.bf16.msra.mxu1 %v927_v2  ;;  %v888_v32 = vpop.permute.xlu0 %887 }
 0x4ee   : > { %v890_v14 = vpop.permute.xlu1 %889 }
 0x4ef   : > { %v891_v15 = vsel %vm445_vm3, %v888_v32, %v890_v14  ;;  %v892_v13 = vsel %vm445_vm3, %v890_v14, %v888_v32 }
 0x4f0   : > { %v893_v38 = vmul.f32 %v892_v13, %v1495_v36  ;;  %v894_v39 = vmul.f32 %v891_v15, %v1498_v37 }
 0x4f1   : > { %v896_v40 = vpop.permute.xlu0 %895 }
 0x4f2   : > { %v929_v41 = vpack.c.bf16 %v893_v38, %v885_v16  ;;  %v898_v42 = vpop.permute.xlu1 %897  ;;  %v930_v43 = vpack.c.bf16 %v894_v39, %v886_v33 }
 0x4f3   : > { %v899_v46 = vsel %vm462_vm4, %v896_v40, %v898_v42  ;;  %v900_v47 = vsel %vm462_vm4, %v898_v42, %v896_v40 }
 0x4f4   : > { %v901_v48 = vmul.f32 %v899_v46, %v1510_v44  ;;  %v902_v34 = vmul.f32 %v900_v47, %v1513_v45  ;;  %953 = vmatprep.subr.bf16.mxu1 %v930_v43 }
 0x4f5   : > { %954 = vmatpush1.bf16.msra.mxu1 %v929_v41  ;;  %v904_v35 = vpop.permute.xlu0 %903 }
 0x4f6   : > { %v931_v36 = vpack.c.bf16 %v901_v48, %v1756_v60  ;;  %v906_v37 = vpop.permute.xlu1 %905  ;;  %v932_v49 = vpack.c.bf16 %v902_v34, %v862_v61 }
 0x4f7   : > { %v907_v50 = vsel %vm479_vm5, %v904_v35, %v906_v37  ;;  %v908_v52 = vsel %vm479_vm5, %v906_v37, %v904_v35 }
 0x4f8   : > { %955 = vmatprep.subr.bf16.mxu1 %v932_v49  ;;  %v909_v56 = vmul.f32 %v907_v50, %v1531_v3  ;;  %v910_v53 = vmul.f32 %v908_v52, %v1535_v7 }
 0x4f9   : > { %956 = vmatpush1.bf16.msra.mxu1 %v931_v36  ;;  %v912_v54 = vpop.permute.xlu0 %911 }
 0x4fa   : > { %v914_v55 = vpop.permute.xlu1 %913 }
 0x4fb   : > { %v915_v44 = vsel %vm496_vm6, %v912_v54, %v914_v55  ;;  %v916_v45 = vsel %vm496_vm6, %v914_v55, %v912_v54 }
 0x4fc   : > { %v917_v51 = vmul.f32 %v915_v44, %v1539_v8  ;;  %v918_v57 = vmul.f32 %v916_v45, %v1542_v11 }
 0x4fd   : > { %v920_v58 = vpop.permute.xlu0 %919 }
 0x4fe   : > { %v933_v59 = vpack.c.bf16 %v917_v51, %v909_v56  ;;  %v922_v60 = vpop.permute.xlu1 %921  ;;  %v934_v61 = vpack.c.bf16 %v918_v57, %v910_v53 }
 0x4ff   : > { %v923_v62 = vsel %vm513_vm7, %v920_v58, %v922_v60  ;;  %v924_v63 = vsel %vm513_vm7, %v922_v60, %v920_v58 }
 0x500   : > { %v925_v4 = vmul.f32 %v923_v62, %v1554_v21  ;;  %v926_v3 = vmul.f32 %v924_v63, %v1557_v22  ;;  %957 = vmatprep.subr.bf16.mxu1 %v934_v61 }
 0x501   : > { %958 = vmatpush1.bf16.msra.mxu1 %v933_v59 }
 0x502   : > { %v935_v7 = vpack.c.bf16 %v925_v4, %v925_v4  ;;  %v936_v8 = vpack.c.bf16 %v926_v3, %v926_v3 }
 0x504   : > { %1141 = vmatprep.subr.msk.bf16.mxu1 %vm545_vm8, %v936_v8  ;;  %v946_v11 = vsel %vm545_vm8, %v935_v7, 0 }
 0x505   : > { %960 = vmatpush1.bf16.msra.mxu1 %v946_v11 }
 0x508   : > { %1142 = vmatmul.mubr.msk.bf16.vlgmr.msra.gmra.mrb[4].mxu1 %vm541_vm9, %v383_v12 }
 0x50e   : > { %v940_v6 = vpop.permute.xlu0 %939 }
 0x5db   : > { %v985_v17 = vpop.f32.mrb[4].mxu1 }
 0x5dc   : > { %v986_v21 = vadd.f32 %v985_v17, %v940_v6  ;;  %v987_v5 = vpop.f32.mrb[5].mxu1 }
 0x5dd   : > { %v988_v22 = vadd.f32 %v987_v5, %v940_v6  ;;  %v989_v18 = vpop.f32.mrb[6].mxu1 }
 0x5de   : > { %v994_v19 = vmul.f32 0.1, %v986_v21  ;;  %v990_v20 = vpop.f32.mrb[7].mxu1  ;;  %vm992_vm14 = vcmp.ge.f32.partialorder %v986_v21, 0.0 }
 0x5df   : > { %v995_v23 = vmul.f32 0.1, %v988_v22  ;;  %vm993_vm15 = vcmp.ge.f32.partialorder %v988_v22, 0.0 }
 0x5e0   : > { %v996_v24 = vsel %vm992_vm14, %v986_v21, %v994_v19 }
 0x5e1   : > { %v997_v26 = vsel %vm993_vm15, %v988_v22, %v995_v23 }
 0x5e2   : > { %v998_v28 = vadd.f32 %v997_v26, %v996_v24 }
 0x5e4   : > { %999 = vadd.xlane.f32.xlu1 %v998_v28 }
 0x671   : > { %v1000_v29 = vpop.xlane.xlu1 %999 }
 0x672   : > { %v1001_v2 = vmul.f32 0.00390625, %v1000_v29 }
 0x674   : > { %v1002_v30 = vsub.f32 %v996_v24, %v1001_v2  ;;  %v1003_v31 = vsub.f32 %v997_v26, %v1001_v2 }
 0x676   : > { %v1004_v9 = vmul.f32 %v1002_v30, %v1002_v30  ;;  %v1005_v10 = vmul.f32 %v1003_v31, %v1003_v31 }
 0x678   : > { %v1006_v32 = vadd.f32 %v1005_v10, %v1004_v9 }
 0x67a   : > { %1007 = vadd.xlane.f32.xlu0 %v1006_v32 }
 0x707   : > { %v1008_v14 = vpop.xlane.xlu0 %1007 }
 0x708   : > { %v1009_v15 = vmul.f32 0.003921569, %v1008_v14 }
 0x70a   : > { %v1010_v13 = vadd.f32 0.0001, %v1009_v15 }
 0x70c   : > { %v1011_v16 = vmul.f32 4.0, %v1010_v13 }
 0x70e   : > { %1202 = vrcp.f32 %v1011_v16 }
 0x718   : > { %v1203_v33 = vpop.eup %1202 }
 0x719   : > { %v1013_v38 = vmul.f32 %v1203_v33, %v1004_v9  ;;  %v1014_v39 = vmul.f32 %v1203_v33, %v1005_v10 }
 0x71b   : > { %v1015_v40 = vadd.f32 0.5, %v1013_v38  ;;  %v1016_v41 = vadd.f32 0.5, %v1014_v39 }
 0x71d   : > { %v1143_v42 = vmul.f32 -1.442695, %v1015_v40  ;;  %v1144_v43 = vmul.f32 -1.442695, %v1016_v41 }
 0x71f   : > { %1204 = vpow2.f32 %v1143_v42 }
 0x720   : > { %1206 = vpow2.f32 %v1144_v43 }
 0x729   : > { %v1205_v46 = vpop.eup %1204 }
 0x72a   : > { %v1207_v47 = vpop.eup %1206  ;;  %v1023_v48 = vadd.f32 1.0, %v1205_v46 }
 0x72b   : > { %v1024_v34 = vadd.f32 1.0, %v1207_v47 }
 0x72c   : > { %1208 = vrcp.f32 %v1023_v48 }
 0x72d   : > { %1210 = vrcp.f32 %v1024_v34 }
 0x736   : > { %v1209_v35 = vpop.eup %1208 }
 0x737   : > { %v1211_v36 = vpop.eup %1210  ;;  %v1029_v37 = vmul.f32 %v1209_v35, %v1661_v25 }
 0x738   : > { %v1030_v49 = vmul.f32 %v1211_v36, %v1663_v27 }
 0x739   : > { %v1031_v50 = vadd.f32 %v1029_v37, %v1397_v0 }
 0x73a   : > { %v1032_v52 = vadd.f32 %v1030_v49, %v1403_v1 }
 0x73b   : > { %vm1033_vm0 = vcmp.ge.f32.partialorder %v1031_v50, 0.0  ;;  %v1035_v54 = vmul.f32 0.2, %v1031_v50 }
 0x73c   : > { %vm1034_vm1 = vcmp.ge.f32.partialorder %v1032_v52, 0.0  ;;  %v1036_v55 = vmul.f32 0.2, %v1032_v52 }
 0x73d   : > { %v1037_v44 = vsel %vm1033_vm0, %v1031_v50, %v1035_v54 }
 0x73e   : > { %v1038_v0 = vsel %vm1034_vm1, %v1032_v52, %v1036_v55  ;;  %1039 = vst [vmem:[%s365_s28] sm:$0xff] %v1037_v44 }
 0x73f   : > { %1040 = vst [vmem:[%s365_s28 + $0x8] sm:$0xff] %v1038_v0 }
 0x740   : > { %1225 = shalt.err (!%p1222_p3)
}
 0x741   : > { %s1226_s20 = scalar_lea.hbm %s1849_s30, 256  ;;  %s1230_s29 = scalar_lea.hbm %s1901_s10, 512 }
 0x742   : > { %p1227_p4 = scmp.ne.s32.totalorder %s1849_s30, %s1226_s20  ;;  %p1231_p9 = scmp.lt.u32.totalorder %s1849_s30, %s1901_s10 }
 0x743   : > { %p1232_p10 = scmp.lt.u32.totalorder %s1230_s29, %s1226_s20  ;;  %p1234_p12 = scmp.lt.u32.totalorder %s1226_s20, %s1849_s30 }
 0x744   : > { %p1228_p7 = pnand %p1227_p4, %p1379_p5 }
 0x745   : > { %p1233_p11 = por %p1232_p10, %p1231_p9 }
 0x746   : > { %p1229_p8 = pneg %p1228_p7 }
 0x747   : > { %p1235_p13 = por %p1234_p12, %p1233_p11 }
 0x749   : > { %p1236_p0 = pnand %p1235_p13, %p1229_p8 }
 0x74b   : > { %1239 = shalt.err (!%p1236_p0)
}
 0x74c   : > { %1152 = dma.vmem_to_hbm [thread:$0]  (%p1379_p5), %s1851_s25, 256, %s1849_s30, %s1042_s17  }
 0x74d PF: > { %p1158_p1 = scmp.ge.s32.totalorder %s1274_s16, 2  ;;  %s1068_s11 = sand.u32 1, %s1262_s13  }
 0x74e   : > { %s1069_s18 = scalar_lea.sflag [#allocation3], %s1068_s11 }
 0x74f   : > { %p1155_p2 = pnand %p1158_p1, %p1383_p6 }
 0x751   : > { %1257 = dma.done.wait (!%p1155_p2), %s1069_s18, 256  }
 0x752   : > { %1259 = vsyncadd (!%p1155_p2), %s1069_s18, 4294967040  ;;  %p20_p3 = scmp.ge.s32.totalorder %s1366_s19, 4   ;;  %s1910_s13 = smov %s1266_s14 }
 0x753   : > { %s1911_s14 = smov %s1270_s15  ;;  %s1912_s15 = smov %s1377_s22 }
 0x754   : > { %s1913_s16 = smov %s1366_s19  ;;  %22 = sbr.rel (!%p20_p3) target bundleno = 3 (0x3), region = 98 }
 0x75b   :  { %1074 = vsyncpa [#allocation3], 1 }
 0x75c   :  { %1076 = vsyncpa [#allocation3 + $0x1], 1 }

</bundles_post_ra>
